<compile_context>
chip_gen: v7x
topology: tpu7x:2x2x1
jax: 0.10.0
libtpu: 0.0.40
codegen_flags: <defaults>
</compile_context>

<pallas_src>
import functools

import numpy as np
import jax
import jax.numpy as jnp
from jax.experimental import pallas as pl
from jax.experimental.pallas import tpu as pltpu


# ----------------------------------------------------------------------------
# helpers
# ----------------------------------------------------------------------------

def _pick_lane_tile(total: int, max_tile: int = 2048) -> int:
    """Largest divisor of `total` <= max_tile, preferring multiples of 128,
    so every block is lane-dense, exactly divides the array, and bounds the
    per-block VMEM footprint at realistic UNet sizes."""
    if total <= max_tile:
        return total
    best, best128 = 1, 0
    for t in range(1, max_tile + 1):
        if total % t == 0:
            best = t
            if t % 128 == 0:
                best128 = t
    return best128 or best


def pack_params(w_t, bias, k=2):
    """Pack ConvTranspose2d parameters once (hoisted out of the forward).

    w_t:  (Ci, Co, k, k)  PyTorch ConvTranspose2d weight layout
    bias: (Co,)
    returns: wmat (Co*k*k, Ci) bf16 with rows ordered (co, kh, kw),
             brep (Co*k*k, 1)  f32
    """
    Ci, Co, kh, kw = w_t.shape
    assert kh == k and kw == k
    wmat = jnp.transpose(w_t, (1, 2, 3, 0)).reshape(Co * k * k, Ci)
    brep = jnp.repeat(bias.astype(jnp.float32), k * k).reshape(Co * k * k, 1)
    return wmat.astype(jnp.bfloat16), brep


# ----------------------------------------------------------------------------
# Pallas kernels
# ----------------------------------------------------------------------------

def _deconv_matmul_kernel(x_ref, w_ref, b_ref, y_ref):
    # x_ref: (1, Ci, T) f32    w_ref: (Co*k*k, Ci) bf16    b_ref: (Co*k*k, 1) f32
    # y_ref: (1, Co*k*k, T) bf16   — lane-dense output (spatial on lanes).
    x = x_ref[0].astype(jnp.bfloat16)          # in-kernel cast, under DMA shadow
    acc = jnp.dot(w_ref[...], x, preferred_element_type=jnp.float32)
    y_ref[0] = (acc + b_ref[...]).astype(jnp.bfloat16)


def pallas_deconv_matmul(x3, wmat, brep, *, max_lane_tile=2048):
    """ConvTranspose2d(kernel==stride) as a fused matmul + bias (+ bf16 cast).

    x3:   (N, Ci, Hi*Wi)  f32
    wmat: (Co*k*k, Ci)    bf16, rows ordered (co, kh, kw)
    brep: (Co*k*k, 1)     f32
    returns (N, Co*k*k, Hi*Wi) bf16
    """
    N, Ci, HW = x3.shape
    CoKK = wmat.shape[0]
    T = _pick_lane_tile(HW, max_lane_tile)
    return pl.pallas_call(
        _deconv_matmul_kernel,
        out_shape=jax.ShapeDtypeStruct((N, CoKK, HW), jnp.bfloat16),
        grid=(N, HW // T),
        in_specs=[
            pl.BlockSpec((1, Ci, T), lambda n, t: (n, 0, t)),
            pl.BlockSpec((CoKK, Ci), lambda n, t: (0, 0)),   # weight-stationary
            pl.BlockSpec((CoKK, 1), lambda n, t: (0, 0)),
        ],
        out_specs=pl.BlockSpec((1, CoKK, T), lambda n, t: (n, 0, t)),
        compiler_params=pltpu.CompilerParams(
            dimension_semantics=("parallel", "parallel"),
            vmem_limit_bytes=48 * 1024 * 1024,
        ),
    )(x3, wmat, brep)


def _concat_channels_kernel(c1, cf_ref, tc_ref, o_ref):
    # cf_ref: (1, C1, T) f32   tc_ref: (1, Co, T) bf16   o_ref: (1, C1+Co, T) f32
    o_ref[:, :c1, :] = cf_ref[...]
    o_ref[:, c1:, :] = tc_ref[...].astype(jnp.float32)


def pallas_concat_channels(cf3, tc3, *, max_lane_tile=4096):
    """Channel concat in the lane-dense (C, Ho*Wo) layout, grid over (N, tiles)."""
    N, C1, HW = cf3.shape
    Co = tc3.shape[1]
    # Sublane alignment of the split store (perf guard; see review).
    assert C1 % 8 == 0, "concat_feature channels must be a multiple of 8 (f32 sublane tile)"
    T = _pick_lane_tile(HW, max_lane_tile)
    return pl.pallas_call(
        functools.partial(_concat_channels_kernel, C1),
        out_shape=jax.ShapeDtypeStruct((N, C1 + Co, HW), jnp.float32),
        grid=(N, HW // T),
        in_specs=[
            pl.BlockSpec((1, C1, T), lambda n, t: (n, 0, t)),
            pl.BlockSpec((1, Co, T), lambda n, t: (n, 0, t)),
        ],
        out_specs=pl.BlockSpec((1, C1 + Co, T), lambda n, t: (n, 0, t)),
        compiler_params=pltpu.CompilerParams(
            dimension_semantics=("parallel", "parallel"),
            vmem_limit_bytes=48 * 1024 * 1024,
        ),
    )(cf3, tc3)


# ----------------------------------------------------------------------------
# Forward pass (UpSamplingBlock)
# ----------------------------------------------------------------------------

def upsampling_block_forward(x_nchw, concat_nchw, wmat, brep, k=2):
    """UpSamplingBlock.forward with pre-packed parameters (see pack_params).

    x_nchw:      (N, Ci, Hi, Wi)  f32
    concat_nchw: (N, C1, Ho, Wo)  f32, Ho = k*Hi, Wo = k*Wi
    wmat, brep:  packed ConvTranspose2d parameters
    returns      (N, C1 + Co, Ho, Wo)  f32, concat_feature channels first
    """
    N, Ci, Hi, Wi = x_nchw.shape
    CoKK = wmat.shape[0]
    Co = CoKK // (k * k)
    Ho, Wo = Hi * k, Wi * k
    N2, C1, Ho2, Wo2 = concat_nchw.shape
    assert (N2, Ho2, Wo2) == (N, Ho, Wo)

    # --- ConvTranspose2d: fused matmul + bias + bf16 cast, lane-dense --------
    x3 = x_nchw.reshape(N, Ci, Hi * Wi)               # free reshape (NCHW)
    y = pallas_deconv_matmul(x3, wmat, brep)          # (N, Co*k*k, Hi*Wi) bf16

    # TODO(synk): the stride-k pixel interleave (depth-to-space) has no
    # rectangular lane-dense BlockSpec / relayout-safe in-kernel form, so this
    # one small transpose stays in XLA — now on bf16, i.e. half the traffic.
    y = y.reshape(N, Co, k, k, Hi, Wi).transpose(0, 1, 4, 2, 5, 3)
    y = y.reshape(N, Co, Ho * Wo)

    # --- channel concat (lane-dense Pallas kernel) ---------------------------
    cf3 = concat_nchw.reshape(N, C1, Ho * Wo).astype(jnp.float32)
    out = pallas_concat_channels(cf3, y)
    return out.reshape(N, C1 + Co, Ho, Wo)


# ----------------------------------------------------------------------------
# Main: deterministic small test + f32 reference
# ----------------------------------------------------------------------------

if __name__ == "__main__":
    # UpSamplingBlock(in_channels=16, out_channels=8, kernel_size=2, stride=2)
    N = 2
    Ci, Co = 16, 8
    Hi = Wi = 16
    k = 2
    Ho, Wo = Hi * k, Wi * k
    C1 = 8                       # skip-connection channels

    key = jax.random.PRNGKey(0)
    kx, kc, kw_, kb = jax.random.split(key, 4)
    x = jax.random.normal(kx, (N, Ci, Hi, Wi), jnp.float32)
    concat_feature = jax.random.normal(kc, (N, C1, Ho, Wo), jnp.float32)
    w = 0.1 * jax.random.normal(kw_, (Ci, Co, k, k), jnp.float32)   # torch layout
    b = 0.1 * jax.random.normal(kb, (Co,), jnp.float32)

    # Parameters packed ONCE, outside the per-step forward.
    wmat, brep = pack_params(w, b, k)
    fwd = jax.jit(functools.partial(upsampling_block_forward, k=k))

    out = fwd(x, concat_feature, wmat, brep)
    out = jax.block_until_ready(out)

    # f32 reference: ConvTranspose2d with kernel == stride (no overlap) + concat
    ref_tc = jnp.einsum("nihw,iokl->nohkwl", x, w,
                        precision=jax.lax.Precision.HIGHEST)
    ref_tc = ref_tc.reshape(N, Co, Ho, Wo) + b[None, :, None, None]
    ref = jnp.concatenate([concat_feature, ref_tc], axis=1)
    ref = jax.block_until_ready(ref)

    assert out.shape == (N, C1 + Co, Ho, Wo), out.shape
    np.testing.assert_allclose(np.asarray(out), np.asarray(ref),
                               rtol=2e-2, atol=2e-2)
    print("KERNEL_OK")
</pallas_src>

<mosaic_0001>
module attributes {stable_mosaic.version = 11 : i64} {
  func.func @_deconv_matmul_kernel(%arg0: i32, %arg1: i32, %arg2: memref<1x16x256xf32, #tpu.memory_space<vmem>>, %arg3: memref<32x16xbf16, #tpu.memory_space<vmem>>, %arg4: memref<32x1xf32, #tpu.memory_space<vmem>>, %arg5: memref<1x32x256xbf16, #tpu.memory_space<vmem>>) attributes {dimension_semantics = [#tpu.dimension_semantics<parallel>, #tpu.dimension_semantics<parallel>], iteration_bounds = array<i64: 2, 1>, scalar_prefetch = 0 : i64, scratch_operands = 0 : i64, tpu.core_type = #tpu.core_type<tc>, window_params = [{transform_indices = @transform_0, window_bounds = array<i64: 1, 16, 256>}, {pipeline_mode = #tpu.pipeline_mode<synchronous>, transform_indices = @transform_1, window_bounds = array<i64: 32, 16>}, {pipeline_mode = #tpu.pipeline_mode<synchronous>, transform_indices = @transform_2, window_bounds = array<i64: 32, 1>}, {transform_indices = @transform_3, window_bounds = array<i64: 1, 32, 256>}]} {
    %c0 = arith.constant 0 : index
    %c0_0 = arith.constant 0 : index
    %c0_1 = arith.constant 0 : index
    %0 = vector.load %arg2[%c0, %c0_0, %c0_1] : memref<1x16x256xf32, #tpu.memory_space<vmem>>, vector<1x16x256xf32>
    %1 = vector.shape_cast %0 : vector<1x16x256xf32> to vector<16x256xf32>
    %2 = arith.truncf %1 : vector<16x256xf32> to vector<16x256xbf16>
    %c0_2 = arith.constant 0 : index
    %c0_3 = arith.constant 0 : index
    %3 = vector.load %arg3[%c0_2, %c0_3] : memref<32x16xbf16, #tpu.memory_space<vmem>>, vector<32x16xbf16>
    %cst = arith.constant dense<0.000000e+00> : vector<32x256xf32>
    %4 = tpu.matmul %3, %2, %cst {dimension_numbers = #tpu.dot_dimension_numbers<[1], [0], [0], [1], [0, 0, 1, 1], [], []>} : vector<32x16xbf16>, vector<16x256xbf16>, vector<32x256xf32> -> vector<32x256xf32>
    %c0_4 = arith.constant 0 : index
    %c0_5 = arith.constant 0 : index
    %5 = vector.load %arg4[%c0_4, %c0_5] : memref<32x1xf32, #tpu.memory_space<vmem>>, vector<32x1xf32>
    %6 = vector.broadcast %5 : vector<32x1xf32> to vector<32x256xf32>
    %7 = arith.addf %4, %6 : vector<32x256xf32>
    %8 = arith.truncf %7 : vector<32x256xf32> to vector<32x256xbf16>
    %c0_6 = arith.constant 0 : index
    %c0_7 = arith.constant 0 : index
    %c0_8 = arith.constant 0 : index
    %9 = vector.load %arg5[%c0_6, %c0_7, %c0_8] : memref<1x32x256xbf16, #tpu.memory_space<vmem>>, vector<1x32x256xbf16>
    %10 = vector.shape_cast %9 : vector<1x32x256xbf16> to vector<32x256xbf16>
    %11 = vector.shape_cast %8 : vector<32x256xbf16> to vector<1x32x256xbf16>
    tpu.vector_store %arg5[%c0_6, %c0_7, %c0_8], %11 {strides = array<i32>} : memref<1x32x256xbf16, #tpu.memory_space<vmem>>, vector<1x32x256xbf16>,
    return
  }
  func.func @transform_0(%arg0: i32, %arg1: i32) -> (i32, i32, i32) {
    %c0_i32 = arith.constant 0 : i32
    %c0_i32_0 = arith.constant 0 : i32
    return %arg0, %c0_i32, %arg1 : i32, i32, i32
  }
  func.func @transform_1(%arg0: i32, %arg1: i32) -> (i32, i32) {
    %c0_i32 = arith.constant 0 : i32
    %c0_i32_0 = arith.constant 0 : i32
    %c0_i32_1 = arith.constant 0 : i32
    return %c0_i32, %c0_i32_0 : i32, i32
  }
  func.func @transform_2(%arg0: i32, %arg1: i32) -> (i32, i32) {
    %c0_i32 = arith.constant 0 : i32
    %c0_i32_0 = arith.constant 0 : i32
    %c0_i32_1 = arith.constant 0 : i32
    return %c0_i32, %c0_i32_0 : i32, i32
  }
  func.func @transform_3(%arg0: i32, %arg1: i32) -> (i32, i32, i32) {
    %c0_i32 = arith.constant 0 : i32
    %c0_i32_0 = arith.constant 0 : i32
    return %arg0, %c0_i32, %arg1 : i32, i32, i32
  }
}

module attributes {stable_mosaic.version = 11 : i64} {
  func.func @_concat_channels_kernel(%arg0: i32, %arg1: i32, %arg2: memref<1x8x1024xf32, #tpu.memory_space<vmem>>, %arg3: memref<1x8x1024xbf16, #tpu.memory_space<vmem>>, %arg4: memref<1x16x1024xf32, #tpu.memory_space<vmem>>) attributes {dimension_semantics = [#tpu.dimension_semantics<parallel>, #tpu.dimension_semantics<parallel>], iteration_bounds = array<i64: 2, 1>, scalar_prefetch = 0 : i64, scratch_operands = 0 : i64, tpu.core_type = #tpu.core_type<tc>, window_params = [{transform_indices = @transform_0, window_bounds = array<i64: 1, 8, 1024>}, {transform_indices = @transform_1, window_bounds = array<i64: 1, 8, 1024>}, {transform_indices = @transform_2, window_bounds = array<i64: 1, 16, 1024>}]} {
    %c0 = arith.constant 0 : index
    %c0_0 = arith.constant 0 : index
    %c0_1 = arith.constant 0 : index
    %0 = vector.load %arg2[%c0, %c0_0, %c0_1] : memref<1x8x1024xf32, #tpu.memory_space<vmem>>, vector<1x8x1024xf32>
    %c0_2 = arith.constant 0 : index
    %c0_3 = arith.constant 0 : index
    %c0_4 = arith.constant 0 : index
    %1 = vector.load %arg4[%c0_2, %c0_3, %c0_4] : memref<1x16x1024xf32, #tpu.memory_space<vmem>>, vector<1x8x1024xf32>
    tpu.vector_store %arg4[%c0_2, %c0_3, %c0_4], %0 {strides = array<i32>} : memref<1x16x1024xf32, #tpu.memory_space<vmem>>, vector<1x8x1024xf32>,
    %c0_5 = arith.constant 0 : index
    %c0_6 = arith.constant 0 : index
    %c0_7 = arith.constant 0 : index
    %2 = vector.load %arg3[%c0_5, %c0_6, %c0_7] : memref<1x8x1024xbf16, #tpu.memory_space<vmem>>, vector<1x8x1024xbf16>
    %3 = arith.extf %2 : vector<1x8x1024xbf16> to vector<1x8x1024xf32>
    %c0_8 = arith.constant 0 : index
    %c8 = arith.constant 8 : index
    %c0_9 = arith.constant 0 : index
    %4 = vector.load %arg4[%c0_8, %c8, %c0_9] : memref<1x16x1024xf32, #tpu.memory_space<vmem>>, vector<1x8x1024xf32>
    tpu.vector_store %arg4[%c0_8, %c8, %c0_9], %3 {strides = array<i32>} : memref<1x16x1024xf32, #tpu.memory_space<vmem>>, vector<1x8x1024xf32>,
    return
  }
  func.func @transform_0(%arg0: i32, %arg1: i32) -> (i32, i32, i32) {
    %c0_i32 = arith.constant 0 : i32
    %c0_i32_0 = arith.constant 0 : i32
    return %arg0, %c0_i32, %arg1 : i32, i32, i32
  }
  func.func @transform_1(%arg0: i32, %arg1: i32) -> (i32, i32, i32) {
    %c0_i32 = arith.constant 0 : i32
    %c0_i32_0 = arith.constant 0 : i32
    return %arg0, %c0_i32, %arg1 : i32, i32, i32
  }
  func.func @transform_2(%arg0: i32, %arg1: i32) -> (i32, i32, i32) {
    %c0_i32 = arith.constant 0 : i32
    %c0_i32_0 = arith.constant 0 : i32
    return %arg0, %c0_i32, %arg1 : i32, i32, i32
  }
}

</mosaic_0001>

<bundles_post_ra>
// kernel: upsampling_block_forward.2
= control target key start
LH: loop header
LB: loop body
LE: loop exit
PB: predicated region body
PF: predicated region fallthrough
CT: control target
= control target key end

     0   :  { %s531_s12 = smov 0   ;;  %s533_s13 = smov 0   ;;  %s589_s0 = inlined_call_operand.vmem [shape: f32[2,16,256], index: 0, kind: input, shape index: {}]   ;;  %s590_s1 = inlined_call_operand.vmem [shape: bf16[32,16], index: 1, kind: input, shape index: {}]   ;;  %s591_s2 = inlined_call_operand.vmem [shape: f32[32,1], index: 2, kind: input, shape index: {}]   ;;  %s592_s3 = inlined_call_operand.vmem [shape: bf16[2,32,256], index: 3, kind: output, shape index: {}]  }
   0x1   :  { %s535_s14 = smov 0  }
   0x2 LB: > { %s25_s15 = sadd.s32 1, %s504_s13  ;;  %p434_p0 = scmp.ge.s32.totalorder %s508_s14, 1  ;;  %s508_s14 = sphi %s535_s14, %s13_s14   ;;  %s504_s13 = sphi %s533_s13, %s594_s13   ;;  %s500_s12 = sphi %s531_s12, %s593_s12  }
   0x3   : > { %p27_p1 = scmp.ge.s32.totalorder %s25_s15, 2  ;;  %p158_p2 = scmp.lt.s32.totalorder %s508_s14, 3 }
   0x5   : > { %s596_s15 = smov (%p27_p1, %s25_s15), 0  ;;  %p159_p3 = pnand %p434_p0, %p158_p2 }
   0x6   : > { %p191_p4 = scmp.lt.s32.totalorder (!%p159_p3), %s500_s12, 1  ;;  %v510_v0 = vmov (!%p159_p3), 0   ;;  %v223_v1 = vld [vmem:[%s591_s2 + $0x10] sm:$0xff] (!%p159_p3)  ;;  %v221_v2 = vld [vmem:[%s591_s2] sm:$0xff] (!%p159_p3)  ;;  %v224_v3 = vld [vmem:[%s591_s2 + $0x18] sm:$0xff] (!%p159_p3)  ;;  %vm255_vm0 = vcmask (!%p159_p3), 130048  }
   0x7   : > { %162 = sbr.rel (%p159_p3) target bundleno = 244 (0xf4), region = 32  ;;  %294 = vmatprep.mubr.bf16.mxu0 (!%p159_p3), %v510_v0  ;;  %304 = vmatprep.mubr.bf16.mxu1 (!%p159_p3), %v510_v0  ;;  %v222_v4 = vld [vmem:[%s591_s2 + $0x8] sm:$0xff] (!%p159_p3)  ;;  %v484_v11 = vld [vmem:[%s590_s1] sm:$0xff] (!%p159_p3)  }
   0x8   : > { %483 = vset.pattern.permute.xlu1 (!%p159_p3), %v510_v0  ;;  %482 = vset.pattern.permute.xlu0 (!%p159_p3), %v510_v0  ;;  %v485_v12 = vld [vmem:[%s590_s1 + $0x8] sm:$0xff] (!%p159_p3)  }
   0x9   : > { %237 = vperm.xlu1 (!%p159_p3), %483, %v223_v1   ;;  %227 = vperm.xlu0 (!%p159_p3), %482, %v221_v2  }
   0xd   : > { %242 = vperm.xlu1 (!%p159_p3), %483, %v224_v3   ;;  %232 = vperm.xlu0 (!%p159_p3), %482, %v222_v4  }
   0xe   : > { %s598_s12 = smov (!%p191_p4, %s500_s12), 1 }
   0xf   : > { %s449_s20 = sshll.u32 %s598_s12, 5 }
  0x10   : > { %s198_s27 = scalar_lea.vmem %s589_s0, %s449_s20  ;;  %s208_s7 = scalar_lea.vmem %s592_s3, %s449_s20 }
  0x11   : > { %v212_v5 = vld [vmem:[%s198_s27 + $0x8] sm:$0xff]  ;;  %v214_v6 = vld [vmem:[%s198_s27 + $0x18] sm:$0xff]  ;;  %v211_v7 = vld [vmem:[%s198_s27] sm:$0xff] }
  0x12   : > { %v216_v8 = vpack.c.bf16 %v214_v6, %v212_v5  ;;  %v213_v9 = vld [vmem:[%s198_s27 + $0x10] sm:$0xff] }
  0x13   : > { %v215_v10 = vpack.c.bf16 %v213_v9, %v211_v7 }
  0x14   : > { %262 = vmatprep.subr.bf16.mxu0 %v216_v8  ;;  %455 = vmatprep.subr.bf16.mxu1 %v216_v8 }
  0x15   : > { %263 = vmatpush1.bf16.msra.mxu0 %v215_v10  ;;  %456 = vmatpush1.bf16.msra.mxu1 %v215_v10 }
  0x18   : > { %441 = vmatmul.mubr.msk.bf16.vlgmr.msra.gmra.mrb[0].mxu0 %vm255_vm0, %v484_v11  ;;  %442 = vmatmul.mubr.msk.bf16.vlgmr.msra.gmra.mrb[0].mxu1 %vm255_vm0, %v485_v12 }
  0x88   : > { %v238_v13 = vpop.permute.xlu1 %237  ;;  %v228_v14 = vpop.permute.xlu0 %227 }
  0x8c   : > { %v243_v15 = vpop.permute.xlu1 %242  ;;  %v233_v16 = vpop.permute.xlu0 %232 }
  0xeb   : > { %v296_v17 = vpop.f32.mrb[0].mxu0  ;;  %v306_v18 = vpop.f32.mrb[0].mxu1 }
  0xec   : > { %v297_v19 = vadd.f32 %v296_v17, %v228_v14  ;;  %v307_v20 = vadd.f32 %v306_v18, %v238_v13  ;;  %v298_v21 = vpop.f32.mrb[1].mxu0  ;;  %v308_v22 = vpop.f32.mrb[1].mxu1 }
  0xed   : > { %v299_v23 = vadd.f32 %v298_v21, %v228_v14  ;;  %v309_v24 = vadd.f32 %v308_v22, %v238_v13  ;;  %v300_v25 = vpop.f32.mrb[2].mxu0  ;;  %v310_v26 = vpop.f32.mrb[2].mxu1 }
  0xee   : > { %v301_v27 = vadd.f32 %v300_v25, %v233_v16  ;;  %v311_v28 = vadd.f32 %v310_v26, %v243_v15  ;;  %v302_v29 = vpop.f32.mrb[3].mxu0  ;;  %v312_v30 = vpop.f32.mrb[3].mxu1 }
  0xef   : > { %v451_v31 = vpack.c.bf16 %v299_v23, %v297_v19  ;;  %v453_v32 = vpack.c.bf16 %v309_v24, %v307_v20  ;;  %v303_v33 = vadd.f32 %v302_v29, %v233_v16  ;;  %v313_v34 = vadd.f32 %v312_v30, %v243_v15 }
  0xf1   : > { %339 = vst [vmem:[%s208_s7] sm:$0xff] %v451_v31  ;;  %341 = vst [vmem:[%s208_s7 + $0x10] sm:$0xff] %v453_v32  ;;  %v452_v35 = vpack.c.bf16 %v303_v33, %v301_v27  ;;  %v454_v36 = vpack.c.bf16 %v313_v34, %v311_v28 }
  0xf3   : > { %340 = vst [vmem:[%s208_s7 + $0x8] sm:$0xff] %v452_v35  ;;  %342 = vst [vmem:[%s208_s7 + $0x18] sm:$0xff] %v454_v36 }
  0xf4 PF: > { %s13_s14 = sadd.s32 1, %s508_s14   ;;  %s593_s12 = smov %s504_s13 }
  0xf5   : > { %p10_p5 = scmp.ge.s32.totalorder %s13_s14, 4   ;;  %s594_s13 = smov %s596_s15 }
  0xf7   :  { %12 = sbr.rel (!%p10_p5) target bundleno = 2 (0x2), region = 62 }

// kernel: upsampling_block_forward.3
= control target key start
LH: loop header
LB: loop body
LE: loop exit
PB: predicated region body
PF: predicated region fallthrough
CT: control target
= control target key end

     0   :  { %s439_s9 = smov 0   ;;  %s441_s10 = smov 0   ;;  %s493_s0 = inlined_call_operand.vmem [shape: f32[2,8,1024], index: 0, kind: input, shape index: {}]   ;;  %s494_s1 = inlined_call_operand.vmem [shape: bf16[2,8,1024], index: 1, kind: input, shape index: {}]   ;;  %s495_s2 = inlined_call_operand.vmem [shape: f32[2,16,1024], index: 2, kind: output, shape index: {}]  }
   0x1   :  { %s443_s11 = smov 0  }
   0x2 LB: > { %s24_s12 = sadd.s32 1, %s418_s10  ;;  %p364_p0 = scmp.ge.s32.totalorder %s422_s11, 1  ;;  %s422_s11 = sphi %s443_s11, %s12_s11   ;;  %s418_s10 = sphi %s441_s10, %s497_s10   ;;  %s414_s9 = sphi %s439_s9, %s496_s9  }
   0x3   : > { %p26_p1 = scmp.ge.s32.totalorder %s24_s12, 2  ;;  %p150_p2 = scmp.lt.s32.totalorder %s422_s11, 3 }
   0x5   : > { %s499_s12 = smov (%p26_p1, %s24_s12), 0  ;;  %p151_p3 = pnand %p364_p0, %p150_p2 }
   0x6   : > { %p190_p4 = scmp.lt.s32.totalorder (!%p151_p3), %s414_s9, 1 }
   0x7   : > { %154 = sbr.rel (%p151_p3) target bundleno = 27 (0x1b), region = 28 }
   0xe   : > { %s501_s9 = smov (!%p190_p4, %s414_s9), 1 }
   0xf   : > { %s373_s13 = sshll.u32 %s501_s9, 6  ;;  %s375_s14 = sshll.u32 %s501_s9, 7 }
  0x10   : > { %s197_s17 = scalar_lea.vmem %s493_s0, %s373_s13  ;;  %s463_s20 = scalar_lea.vmem %s495_s2, %s375_s14 }
  0x11   : > { %v219_v0 = vld [vmem:[%s197_s17] sm:$0xff]  ;;  %v220_v1 = vld [vmem:[%s197_s17 + $0x8] sm:$0xff]  ;;  %v221_v2 = vld [vmem:[%s197_s17 + $0x10] sm:$0xff]  ;;  %s374_s21 = sshll.u32 %s501_s9, 5 }
  0x12   : > { %227 = vst [vmem:[%s463_s20] sm:$0xff] %v219_v0  ;;  %228 = vst [vmem:[%s463_s20 + $0x8] sm:$0xff] %v220_v1  ;;  %v222_v3 = vld [vmem:[%s197_s17 + $0x18] sm:$0xff]  ;;  %v223_v4 = vld [vmem:[%s197_s17 + $0x20] sm:$0xff]  ;;  %s207_s24 = scalar_lea.vmem %s494_s1, %s374_s21 }
  0x13   : > { %229 = vst [vmem:[%s463_s20 + $0x10] sm:$0xff] %v221_v2  ;;  %v224_v5 = vld [vmem:[%s197_s17 + $0x28] sm:$0xff]  ;;  %230 = vst [vmem:[%s463_s20 + $0x18] sm:$0xff] %v222_v3  ;;  %v225_v6 = vld [vmem:[%s197_s17 + $0x30] sm:$0xff] }
  0x14   : > { %231 = vst [vmem:[%s463_s20 + $0x20] sm:$0xff] %v223_v4  ;;  %232 = vst [vmem:[%s463_s20 + $0x28] sm:$0xff] %v224_v5  ;;  %v226_v7 = vld [vmem:[%s197_s17 + $0x38] sm:$0xff]  ;;  %v235_v8 = vld [vmem:[%s207_s24] sm:$0xff] }
  0x15   : > { %233 = vst [vmem:[%s463_s20 + $0x30] sm:$0xff] %v225_v6  ;;  %234 = vst [vmem:[%s463_s20 + $0x38] sm:$0xff] %v226_v7  ;;  %v239_v9 = vunpack.c.l.bf16 %v235_v8  ;;  %v240_v10 = vunpack.c.h.bf16 %v235_v8  ;;  %v236_v11 = vld [vmem:[%s207_s24 + $0x8] sm:$0xff]  ;;  %v237_v12 = vld [vmem:[%s207_s24 + $0x10] sm:$0xff] }
  0x16   : > { %v238_v13 = vld [vmem:[%s207_s24 + $0x18] sm:$0xff]  ;;  %v241_v14 = vunpack.c.l.bf16 %v236_v11  ;;  %v242_v15 = vunpack.c.h.bf16 %v236_v11  ;;  %v243_v16 = vunpack.c.l.bf16 %v237_v12  ;;  %v244_v17 = vunpack.c.h.bf16 %v237_v12 }
  0x17   : > { %247 = vst [vmem:[%s463_s20 + $0x40] sm:$0xff] %v239_v9  ;;  %248 = vst [vmem:[%s463_s20 + $0x48] sm:$0xff] %v240_v10  ;;  %v245_v18 = vunpack.c.l.bf16 %v238_v13  ;;  %v246_v19 = vunpack.c.h.bf16 %v238_v13 }
  0x18   : > { %249 = vst [vmem:[%s463_s20 + $0x50] sm:$0xff] %v241_v14  ;;  %250 = vst [vmem:[%s463_s20 + $0x58] sm:$0xff] %v242_v15 }
  0x19   : > { %251 = vst [vmem:[%s463_s20 + $0x60] sm:$0xff] %v243_v16  ;;  %252 = vst [vmem:[%s463_s20 + $0x68] sm:$0xff] %v244_v17 }
  0x1a   : > { %253 = vst [vmem:[%s463_s20 + $0x70] sm:$0xff] %v245_v18  ;;  %254 = vst [vmem:[%s463_s20 + $0x78] sm:$0xff] %v246_v19 }
  0x1b PF: > { %s12_s11 = sadd.s32 1, %s422_s11   ;;  %s496_s9 = smov %s418_s10 }
  0x1c   : > { %p9_p5 = scmp.ge.s32.totalorder %s12_s11, 4   ;;  %s497_s10 = smov %s499_s12 }
  0x1e   :  { %11 = sbr.rel (!%p9_p5) target bundleno = 2 (0x2), region = 61 }

</bundles_post_ra>
